<compile_context>
chip_gen: v6e
topology: v6e:2x2x1
jax: 0.10.0
libtpu: 0.0.40
codegen_flags: <defaults>
</compile_context>

<pallas_src>
import math
import functools

import jax
import jax.numpy as jnp
from jax.experimental import pallas as pl
from jax.experimental.pallas import tpu as pltpu


# ---------------------------------------------------------------------------
# Linear projection kernel (row-tiled; weight pre-transposed in the wrapper)
# ---------------------------------------------------------------------------
def _linear_kernel(x_ref, wt_ref, b_ref, o_ref):
    o_ref[...] = (
        jnp.dot(x_ref[...], wt_ref[...], preferred_element_type=jnp.float32)
        + b_ref[...]
    ).astype(o_ref.dtype)


def pallas_linear(x, w, b, row_tile=256):
    n, d_in = x.shape
    d_out = w.shape[0]
    wt = w.T                     # one-time transpose in the wrapper (not in-kernel)
    tile = row_tile if (n % row_tile == 0) else n
    return pl.pallas_call(
        _linear_kernel,
        out_shape=jax.ShapeDtypeStruct((n, d_out), jnp.float32),
        grid_spec=pltpu.PrefetchScalarGridSpec(
            num_scalar_prefetch=0,
            grid=(n // tile,),
            in_specs=[
                pl.BlockSpec((tile, d_in), lambda i: (i, 0)),
                pl.BlockSpec((d_in, d_out), lambda i: (0, 0)),
                pl.BlockSpec((1, d_out), lambda i: (0, 0)),
            ],
            out_specs=pl.BlockSpec((tile, d_out), lambda i: (i, 0)),
        ),
        compiler_params=pltpu.CompilerParams(dimension_semantics=("parallel",)),
    )(x, wt, b.reshape(1, -1))


# ---------------------------------------------------------------------------
# Disentangled attention kernel: grid = (batch, q-tile, k-tile), all heads per step
# ---------------------------------------------------------------------------
def _rel_attn_kernel(q_ref, k_ref, v_ref, rk_ref, rq_ref, idx_ref, mask_ref,
                     rv_ref, o_ref, m_sc, l_sc, acc_sc, *, h, d_k, n_pos):
    ki = pl.program_id(2)
    nk = pl.num_programs(2)

    @pl.when(ki == 0)
    def _init():
        m_sc[...] = jnp.full(m_sc.shape, -jnp.inf, jnp.float32)
        l_sc[...] = jnp.zeros(l_sc.shape, jnp.float32)
        acc_sc[...] = jnp.zeros(acc_sc.shape, jnp.float32)

    q = q_ref[0]          # [tq, D]   (heads concatenated along lanes)
    k = k_ref[0]          # [tk, D]
    v = v_ref[0]          # [tk, D]
    rk = rk_ref[0]        # [h, P, d_k]
    rq = rq_ref[0]        # [h, P, d_k]
    idx = idx_ref[0]      # [tq, tk]  int32 relative-position indices
    mrow = mask_ref[0]    # [1, tk]   int32 (nonzero = masked)
    rv = rv_ref[0]        # [tq, tk, D]

    tq, tk = idx.shape
    inv_scale = 1.0 / (3.0 * math.sqrt(d_k))   # scale_factor = 3 (content + c2p + p2c)

    # One-hot of the relative-position indices, built ONCE per (q,k) tile and
    # reused for every head; the two gathers are fused into one multiply-reduce.
    # TODO(synk): replace with a native dynamic gather / MXU one-hot matmul once
    # take_along_axis lowering is guaranteed on all target generations.
    pos_iota = jax.lax.broadcasted_iota(jnp.int32, (tq, tk, n_pos), 2)
    onehot = (idx[:, :, None] == pos_iota).astype(jnp.float32)      # [tq, tk, P]

    masked = mrow != 0                                              # [1, tk]

    for hh in range(h):                       # h is small; static unroll
        sl = slice(hh * d_k, (hh + 1) * d_k)
        q_h = q[:, sl]                        # [tq, d_k]
        k_h = k[:, sl]                        # [tk, d_k]
        v_h = v[:, sl]                        # [tk, d_k]

        # content-content scores (MXU, contract over d_k; no explicit transpose)
        s = jax.lax.dot_general(q_h, k_h, (((1,), (1,)), ((), ())),
                                preferred_element_type=jnp.float32)   # [tq, tk]
        # raw content<->position scores
        c2p = jax.lax.dot_general(q_h, rk[hh], (((1,), (1,)), ((), ())),
                                  preferred_element_type=jnp.float32)  # [tq, P]
        p2c = jax.lax.dot_general(k_h, rq[hh], (((1,), (1,)), ((), ())),
                                  preferred_element_type=jnp.float32)  # [tk, P]
        # fused gather: rel[i, j] = c2p[i, idx[i,j]] + p2c[j, idx[i,j]]
        rel = jnp.sum(onehot * (c2p[:, None, :] + p2c[None, :, :]), axis=-1)

        s = (s + rel) * inv_scale
        s = jnp.where(masked, -1e9, s)

        # online softmax (flash-style) over the key tiles
        m_prev = m_sc[hh]                                            # [tq, 1]
        m_new = jnp.maximum(m_prev, jnp.max(s, axis=-1, keepdims=True))
        alpha = jnp.exp(m_prev - m_new)
        p = jnp.exp(s - m_new)                                       # [tq, tk]

        l_sc[hh] = alpha * l_sc[hh] + jnp.sum(p, axis=-1, keepdims=True)

        ctx = jax.lax.dot_general(p, v_h, (((1,), (0,)), ((), ())),
                                  preferred_element_type=jnp.float32)  # [tq, d_k]
        # rel_v term on the MXU: batched (over query rows) contraction over keys
        rv_h = rv[:, :, sl]                                          # [tq, tk, d_k]
        ctx_v = jnp.einsum('bqk,bkd->bqd', p[:, None, :], rv_h,
                           preferred_element_type=jnp.float32)[:, 0, :]

        acc_sc[hh] = alpha * acc_sc[hh] + ctx + ctx_v
        m_sc[hh] = m_new

    # TODO(synk): nn.Dropout(p=0.1) on p_attn treated as identity (inference mode).

    @pl.when(ki == nk - 1)
    def _finalize():
        outs = []
        for hh in range(h):
            inv_l = pl.reciprocal(l_sc[hh], approx=True)             # EUP slot
            outs.append(acc_sc[hh] * inv_l)
        # single lane-dense [tq, D] store (heads concatenated along lanes)
        o_ref[0] = jnp.concatenate(outs, axis=-1).astype(o_ref.dtype)


# ---------------------------------------------------------------------------
# Module wrapper
# ---------------------------------------------------------------------------
def disentangled_self_attention(query, key, value, mask, rel_pos, rel_q, rel_k,
                                rel_v, params, h, q_tile=128, k_tile=128):
    B, L, D = query.shape
    d_k = D // h
    P = rel_q.shape[-2]
    Wq, bq, Wk, bk, Wv, bv, Wo, bo = params

    # Projections stay in [B, L, D]; the head split happens inside the attention
    # kernel via static lane slices (no transpose_for_scores HBM copies).
    q_p = pallas_linear(query.reshape(B * L, D), Wq, bq).reshape(B, L, D)
    k_p = pallas_linear(key.reshape(B * L, D), Wk, bk).reshape(B, L, D)
    v_p = pallas_linear(value.reshape(B * L, D), Wv, bv).reshape(B, L, D)

    tq = L if L <= q_tile else q_tile
    tk = L if L <= k_tile else k_tile
    assert L % tq == 0 and L % tk == 0, "sequence length must divide the tile sizes"
    nq, nk = L // tq, L // tk

    rel_pos_i = rel_pos.astype(jnp.int32)                  # [B, L, L] (no h broadcast)
    mask_i = mask.reshape(B, 1, L).astype(jnp.int32)       # [B, 1, L] (no h broadcast)

    kernel = functools.partial(_rel_attn_kernel, h=h, d_k=d_k, n_pos=P)
    ctx = pl.pallas_call(
        kernel,
        out_shape=jax.ShapeDtypeStruct((B, L, D), jnp.float32),
        grid_spec=pltpu.PrefetchScalarGridSpec(
            num_scalar_prefetch=0,
            grid=(B, nq, nk),
            in_specs=[
                pl.BlockSpec((1, tq, D), lambda b, qi, ki: (b, qi, 0)),          # q
                pl.BlockSpec((1, tk, D), lambda b, qi, ki: (b, ki, 0)),          # k
                pl.BlockSpec((1, tk, D), lambda b, qi, ki: (b, ki, 0)),          # v
                pl.BlockSpec((1, h, P, d_k), lambda b, qi, ki: (b, 0, 0, 0)),    # rel_k
                pl.BlockSpec((1, h, P, d_k), lambda b, qi, ki: (b, 0, 0, 0)),    # rel_q
                pl.BlockSpec((1, tq, tk), lambda b, qi, ki: (b, qi, ki)),        # rel_pos
                pl.BlockSpec((1, 1, tk), lambda b, qi, ki: (b, 0, ki)),          # mask
                pl.BlockSpec((1, tq, tk, D), lambda b, qi, ki: (b, qi, ki, 0)),  # rel_v
            ],
            out_specs=pl.BlockSpec((1, tq, D), lambda b, qi, ki: (b, qi, 0)),
            scratch_shapes=[
                pltpu.VMEM((h, tq, 1), jnp.float32),    # running max per head
                pltpu.VMEM((h, tq, 1), jnp.float32),    # running sum per head
                pltpu.VMEM((h, tq, d_k), jnp.float32),  # context accumulator per head
            ],
        ),
        compiler_params=pltpu.CompilerParams(
            dimension_semantics=("parallel", "parallel", "arbitrary")),
    )(q_p, k_p, v_p, rel_k, rel_q, rel_pos_i, mask_i, rel_v)

    out = pallas_linear(ctx.reshape(B * L, D), Wo, bo).reshape(B, L, D)
    return out, None


# ---------------------------------------------------------------------------
# Pure-JAX reference (mirrors the PyTorch forward) for a correctness check
# ---------------------------------------------------------------------------
def reference(query, key, value, mask, rel_pos, rel_q, rel_k, rel_v, params, h):
    Wq, bq, Wk, bk, Wv, bv, Wo, bo = params
    B, L, D = query.shape
    d_k = D // h

    def lin(x, W, b):
        return x @ W.T + b

    def tfs(x):
        return x.reshape(B, L, h, d_k).transpose(0, 2, 1, 3)

    q = tfs(lin(query, Wq, bq))
    k = tfs(lin(key, Wk, bk))
    v = tfs(lin(value, Wv, bv))

    rp = jnp.broadcast_to(rel_pos[:, None, :, :], (B, h, L, L))
    scores = q @ k.transpose(0, 1, 3, 2)
    c2p = jnp.take_along_axis(q @ rel_k.transpose(0, 1, 3, 2), rp, axis=-1)
    p2c = jnp.take_along_axis(k @ rel_q.transpose(0, 1, 3, 2),
                              rp.transpose(0, 1, 3, 2), axis=-1).transpose(0, 1, 3, 2)
    scores = (scores + c2p + p2c) / (3.0 * math.sqrt(d_k))
    scores = jnp.where(mask[:, None, None, :], -1e9, scores)
    p = jax.nn.softmax(scores, axis=-1)
    ctx = p @ v
    rv = rel_v.reshape(B, L, L, h, d_k).transpose(0, 3, 1, 2, 4)
    ctx = ctx + jnp.einsum('bhij,bhijd->bhid', p, rv)
    out = ctx.transpose(0, 2, 1, 3).reshape(B, L, D)
    return lin(out, Wo, bo)


# ---------------------------------------------------------------------------
if __name__ == "__main__":
    B, h, L, D = 2, 4, 8, 32
    d_k = D // h
    P = 2 * L  # number of relative-position buckets

    key0 = jax.random.PRNGKey(0)
    ks = jax.random.split(key0, 12)
    query = jax.random.normal(ks[0], (B, L, D), jnp.float32)
    key_in = jax.random.normal(ks[1], (B, L, D), jnp.float32)
    value = jax.random.normal(ks[2], (B, L, D), jnp.float32)
    rel_q = jax.random.normal(ks[3], (B, h, P, d_k), jnp.float32)
    rel_k = jax.random.normal(ks[4], (B, h, P, d_k), jnp.float32)
    rel_v = jax.random.normal(ks[5], (B, L, L, D), jnp.float32)

    i_idx = jnp.arange(L)[:, None]
    j_idx = jnp.arange(L)[None, :]
    rel_pos = jnp.broadcast_to((j_idx - i_idx + L).astype(jnp.int32), (B, L, L))

    valid_len = jnp.array([L, L - 2], dtype=jnp.int32)
    mask = jnp.arange(L)[None, :] >= valid_len[:, None]   # bool [B, L], True = masked

    def init_linear(k, d_out, d_in):
        k1, k2 = jax.random.split(k)
        bound = 1.0 / math.sqrt(d_in)
        W = jax.random.uniform(k1, (d_out, d_in), jnp.float32, -bound, bound)
        b = jax.random.uniform(k2, (d_out,), jnp.float32, -bound, bound)
        return W, b

    Wq, bq = init_linear(ks[6], D, D)
    Wk, bk = init_linear(ks[7], D, D)
    Wv, bv = init_linear(ks[8], D, D)
    Wo, bo = init_linear(ks[9], D, D)
    params = (Wq, bq, Wk, bk, Wv, bv, Wo, bo)

    out, attn = disentangled_self_attention(query, key_in, value, mask, rel_pos,
                                            rel_q, rel_k, rel_v, params, h)
    out = jax.block_until_ready(out)

    ref = reference(query, key_in, value, mask, rel_pos, rel_q, rel_k, rel_v,
                    params, h)
    assert out.shape == (B, L, D)
    # tolerance accounts for the approximate (EUP) reciprocal in the softmax finalize
    assert jnp.allclose(out, ref, atol=1e-2, rtol=1e-2), "mismatch vs reference"
    print("KERNEL_OK")
</pallas_src>

<mosaic_0001>
module attributes {stable_mosaic.version = 11 : i64} {
  func.func @_linear_kernel(%arg0: i32, %arg1: memref<16x32xf32, #tpu.memory_space<vmem>>, %arg2: memref<32x32xf32, #tpu.memory_space<vmem>>, %arg3: memref<1x32xf32, #tpu.memory_space<vmem>>, %arg4: memref<16x32xf32, #tpu.memory_space<vmem>>) attributes {dimension_semantics = [#tpu.dimension_semantics<parallel>], iteration_bounds = array<i64: 1>, scalar_prefetch = 0 : i64, scratch_operands = 0 : i64, tpu.core_type = #tpu.core_type<tc>, window_params = [{transform_indices = @transform_0, window_bounds = array<i64: 16, 32>}, {pipeline_mode = #tpu.pipeline_mode<synchronous>, transform_indices = @transform_1, window_bounds = array<i64: 32, 32>}, {pipeline_mode = #tpu.pipeline_mode<synchronous>, transform_indices = @transform_2, window_bounds = array<i64: 1, 32>}, {transform_indices = @transform_3, window_bounds = array<i64: 16, 32>}]} {
    %c0 = arith.constant 0 : index
    %c0_0 = arith.constant 0 : index
    %0 = vector.load %arg1[%c0, %c0_0] : memref<16x32xf32, #tpu.memory_space<vmem>>, vector<16x32xf32>
    %c0_1 = arith.constant 0 : index
    %c0_2 = arith.constant 0 : index
    %1 = vector.load %arg2[%c0_1, %c0_2] : memref<32x32xf32, #tpu.memory_space<vmem>>, vector<32x32xf32>
    %cst = arith.constant dense<0.000000e+00> : vector<16x32xf32>
    %2 = tpu.matmul %0, %1, %cst {dimension_numbers = #tpu.dot_dimension_numbers<[1], [0], [0], [1], [0, 0, 1, 1], [], []>} : vector<16x32xf32>, vector<32x32xf32>, vector<16x32xf32> -> vector<16x32xf32>
    %c0_3 = arith.constant 0 : index
    %c0_4 = arith.constant 0 : index
    %3 = vector.load %arg3[%c0_3, %c0_4] : memref<1x32xf32, #tpu.memory_space<vmem>>, vector<1x32xf32>
    %4 = vector.broadcast %3 : vector<1x32xf32> to vector<16x32xf32>
    %5 = arith.addf %2, %4 : vector<16x32xf32>
    %c0_5 = arith.constant 0 : index
    %c0_6 = arith.constant 0 : index
    %6 = vector.load %arg4[%c0_5, %c0_6] : memref<16x32xf32, #tpu.memory_space<vmem>>, vector<16x32xf32>
    tpu.vector_store %arg4[%c0_5, %c0_6], %5 {strides = array<i32>} : memref<16x32xf32, #tpu.memory_space<vmem>>, vector<16x32xf32>,
    return
  }
  func.func @transform_0(%arg0: i32) -> (i32, i32) {
    %c0_i32 = arith.constant 0 : i32
    %c0_i32_0 = arith.constant 0 : i32
    return %arg0, %c0_i32 : i32, i32
  }
  func.func @transform_1(%arg0: i32) -> (i32, i32) {
    %c0_i32 = arith.constant 0 : i32
    %c0_i32_0 = arith.constant 0 : i32
    %c0_i32_1 = arith.constant 0 : i32
    return %c0_i32, %c0_i32_0 : i32, i32
  }
  func.func @transform_2(%arg0: i32) -> (i32, i32) {
    %c0_i32 = arith.constant 0 : i32
    %c0_i32_0 = arith.constant 0 : i32
    %c0_i32_1 = arith.constant 0 : i32
    return %c0_i32, %c0_i32_0 : i32, i32
  }
  func.func @transform_3(%arg0: i32) -> (i32, i32) {
    %c0_i32 = arith.constant 0 : i32
    %c0_i32_0 = arith.constant 0 : i32
    return %arg0, %c0_i32 : i32, i32
  }
}

</mosaic_0001>

<bundles_post_ra>
// kernel: tpu_custom_call.1
= control target key start
LH: loop header
LB: loop body
LE: loop exit
PB: predicated region body
PF: predicated region fallthrough
CT: control target
= control target key end

     0   :  { %8 = vsyncpa [#allocation3], 0  ;;  %s299_s0 = inlined_call_operand.hbm [shape: f32[16,32], index: 0, kind: input, shape index: {}]   ;;  %s300_s1 = inlined_call_operand.hbm [shape: f32[32,32], index: 1, kind: input, shape index: {}]   ;;  %s301_s2 = inlined_call_operand.vmem [shape: f32[1,32], index: 2, kind: input, shape index: {}]   ;;  %s302_s3 = inlined_call_operand.hbm [shape: f32[16,32], index: 3, kind: output, shape index: {}]  }
   0x1   :  { %9 = vsyncpa [#allocation6], 0 }
   0x2   :  { %10 = vsyncpa [#allocation4], 0  ;;  %s249_s12 = smov [#allocation2]  }
   0x3   :  { %s16_s13 = sshll.u32 %s249_s12, 4  ;;  %s17_s13 = int_to_ptr.vmem [resolvable:$true] %s16_s13 }
   0x4   :  { %s191_s14 = scalar_lea.vmem %s17_s13, 256  ;;  %p196_p1 = scmp.lt.s32.totalorder %s17_s13, %s17_s13 }
   0x5   :  { %p192_p0 = scmp.ne.s32.totalorder %s17_s13, %s191_s14  ;;  %p197_p2 = scmp.lt.s32.totalorder %s191_s14, %s191_s14 }
   0x7   :  { %p198_p3 = por %p197_p2, %p196_p1 }
   0x9   :  { %p199_p4 = pnand %p198_p3, %p192_p0 }
   0xb   :  { %202 = shalt.err (!%p199_p4)
}
   0xc   :  { %s250_s15 = smov 128   ;;  %s251_s16 = smov 8  }
   0xd   :  { %22 = dma.hbm_to_vmem [thread:$0]  %s299_s0, 256, %s17_s13, [#allocation3], %s250_s15, %s250_s15, %s251_s16  }
   0xe   :  { %s252_s19 = smov [#allocation5]  }
   0xf   :  { %s28_s20 = sshll.u32 %s252_s19, 4  ;;  %s29_s20 = int_to_ptr.vmem [resolvable:$true] %s28_s20 }
  0x10   :  { %s211_s21 = scalar_lea.vmem %s29_s20, 512  ;;  %p216_p6 = scmp.lt.s32.totalorder %s29_s20, %s29_s20 }
  0x11   :  { %p212_p5 = scmp.ne.s32.totalorder %s29_s20, %s211_s21  ;;  %p217_p7 = scmp.lt.s32.totalorder %s211_s21, %s211_s21 }
  0x13   :  { %p218_p8 = por %p217_p7, %p216_p6 }
  0x15   :  { %p219_p9 = pnand %p218_p8, %p212_p5 }
  0x17   :  { %222 = shalt.err (!%p219_p9)
}
  0x18   :  { %34 = dma.hbm_to_vmem [thread:$0]  %s300_s1, 512, %s29_s20, [#allocation6], %s250_s15, %s250_s15, %s251_s16  }
  0x19   :  { %243 = dma.done.wait [#allocation3], 256  }
  0x1a   :  { %244 = vsyncadd [#allocation3], 4294967040 }
  0x1b   :  { %245 = dma.done.wait [#allocation6], 512  }
  0x1c   :  { %246 = vsyncadd [#allocation6], 4294966784  ;;  %vm56_vm0 = vcmask 261120   ;;  %v48_v0 = vld [vmem:[#allocation5 + $0x18] sm:$0xff]  ;;  %v47_v1 = vld [vmem:[#allocation5 + $0x10] sm:$0xff]  ;;  %s253_s24 = smov [#allocation7]  }
  0x1d   :  { %167 = vmatprep.subr.mxu0 %v48_v0  ;;  %v43_v2 = vld [vmem:[#allocation2] sm:$0xff]  ;;  %v46_v3 = vld [vmem:[#allocation5 + $0x8] sm:$0xff]  ;;  %v45_v4 = vld [vmem:[#allocation5] sm:$0xff]  ;;  %s145_s25 = sshll.u32 %s253_s24, 4  ;;  %s146_s25 = int_to_ptr.vmem [resolvable:$true] %s145_s25 }
  0x1e   :  { %168 = vmatpush3.msra.mxu0 %v48_v0  ;;  %175 = vmatprep.mubr.msk.f32.mxu0 %vm56_vm0, %v43_v2  ;;  %v44_v5 = vld [vmem:[#allocation2 + $0x8] sm:$0xff]  ;;  %v158_v6 = vld [vmem:[%s301_s2] ss:$0 sm:$0xff]  ;;  %s223_s26 = scalar_lea.vmem %s146_s25, 256  ;;  %p228_p11 = scmp.lt.s32.totalorder %s146_s25, %s146_s25 }
  0x1f   :  { %169 = vmatprep.subr.mxu0 %v47_v1  ;;  %p224_p10 = scmp.ne.s32.totalorder %s146_s25, %s223_s26  ;;  %p229_p12 = scmp.lt.s32.totalorder %s223_s26, %s223_s26 }
  0x20   :  { %170 = vmatpush3.msra.mxu0 %v47_v1 }
  0x21   :  { %171 = vmatprep.subr.mxu0 %v46_v3  ;;  %p230_p13 = por %p229_p12, %p228_p11 }
  0x22   :  { %172 = vmatpush3.msra.mxu0 %v46_v3 }
  0x23   :  { %173 = vmatprep.subr.mxu0 %v45_v4  ;;  %p231_p0 = pnand %p230_p13, %p224_p10 }
  0x24   :  { %174 = vmatpush3.msra.mxu0 %v45_v4 }
  0x25   :  { %176 = vmatmul.mubr.msk.f32.vlgmr.msra.gmra.mxu0 %vm56_vm0, %v44_v5 }
  0xe5   :  { %v177_v7 = vpop.f32.mrf.mxu0 }
  0xe6   :  { %v135_v8 = vadd.f32 %v177_v7, %v158_v6 }
  0xe7   :  { %v129_v9 = vpop.f32.mrf.mxu0 }
  0xe8   :  { %139 = vst.msk [vmem:[#allocation7 + $0x8] sm:$0xff] %vm56_vm0, %v135_v8  ;;  %v130_v10 = vadd.f32 %v158_v6, %v129_v9 }
  0xea   :  { %138 = vst.msk [vmem:[#allocation7] sm:$0xff] %vm56_vm0, %v130_v10 }
  0xeb   :  { %234 = shalt.err (!%p231_p0)
}
  0xec   :  { %151 = dma.vmem_to_hbm [thread:$0]  %s146_s25, 256, %s302_s3, [#allocation4], %s250_s15, %s250_s15, %s251_s16  }
  0xed   :  { %247 = dma.done.wait [#allocation4], 256  }
  0xee   :  { %248 = vsyncadd [#allocation4], 4294967040 }
  0xef   :  { %155 = vsyncpa [#allocation3], 1 }
  0xf0   :  { %156 = vsyncpa [#allocation6], 1 }
  0xf1   :  { %157 = vsyncpa [#allocation4], 1 }

</bundles_post_ra>
